<compile_context>
chip_gen: v7x
topology: tpu7x:2x2x1
jax: 0.10.0
libtpu: 0.0.40
codegen_flags: <defaults>
</compile_context>

<pallas_src>
import functools
import math

import jax
import jax.numpy as jnp
import numpy as np
from jax.experimental import pallas as pl
from jax.experimental.pallas import tpu as pltpu

BISECTION_TOL = 0.01
MAX_BISECTION_ITER = 500
_BISECTION_STEPS = 50      # f32 bisection hits machine precision long before 50 halvings
_NEG_PAD = -1e30           # padding value: exp(_NEG_PAD / reg) underflows to exactly 0
_POS_BIG = 3.0e38


def _round_up(x, m):
    return (x + m - 1) // m * m


# ---------------------------------------------------------------------------
# Phase 1: per-sample cross entropy  v_i = logsumexp(logits_i) - logits_i[t_i]
# ---------------------------------------------------------------------------
def _cross_entropy_kernel(logits_ref, targets_ref, v_ref):
    logits = logits_ref[...]                      # (TB, C) f32
    tgt = targets_ref[...]                        # (TB, 1) int32
    tb, c = logits.shape
    mx = jnp.max(logits, axis=-1, keepdims=True)
    lse = mx + jnp.log(jnp.sum(jnp.exp(logits - mx), axis=-1, keepdims=True))
    cls_iota = jax.lax.broadcasted_iota(jnp.int32, (tb, c), 1)
    # no f32 one-hot temporary: select-and-reduce in a single pass
    picked = jnp.sum(jnp.where(cls_iota == tgt, logits, 0.0),
                     axis=-1, keepdims=True)
    v_ref[...] = (lse - picked).astype(jnp.float32)


# ---------------------------------------------------------------------------
# Phase 2: soft-CVaR eta search + regularized value on the lane-dense v slab
# ---------------------------------------------------------------------------
def _soft_cvar_eta_kernel(v_ref, out_ref, *, batch, size, reg, tol, n_iter):
    vs = v_ref[...]                               # (R, 128) f32, lane-dense
    r, l = vs.shape
    m = float(batch)
    inv_m = 1.0 / m
    inv_size = 1.0 / size
    inv_reg = 1.0 / reg
    log_m = math.log(m)

    row = jax.lax.broadcasted_iota(jnp.int32, (r, l), 0)
    col = jax.lax.broadcasted_iota(jnp.int32, (r, l), 1)
    mask = (row * l + col) < batch                # real samples

    v = jnp.where(mask, vs, jnp.float32(_NEG_PAD))   # pads contribute exactly 0
    w = v * inv_reg                                  # hoisted: v / reg
    vmax = jnp.max(v)
    vmin = jnp.min(jnp.where(mask, vs, jnp.float32(_POS_BIG)))

    def f(eta):
        # p_i = min(exp((v_i - eta)/reg), 1/size) / m ; return 1 - sum(p)
        p = jnp.minimum(jnp.exp(w - eta * inv_reg), inv_size)
        return 1.0 - jnp.sum(p) * inv_m

    # Analytic bracket (replaces the dynamic interval-expansion loop):
    #   f(max(v)) >= 0 always; f(min(v) - reg*log(1/size)) <= 0 always (full clamp).
    # Use the reference eta_min = reg*logsumexp(v/reg - log m) whenever it already
    # brackets (clamp inactive) so the common path matches the PyTorch bisection.
    z = w - log_m
    zmax = jnp.max(z)
    eta_min_soft = reg * (zmax + jnp.log(jnp.sum(jnp.exp(z - zmax))))
    eta_lo_hard = vmin - reg * math.log(inv_size)
    lo = jnp.where(f(eta_min_soft) <= 0.0, eta_min_soft, eta_lo_hard)
    hi = vmax

    def body(_, carry):
        lo, hi, eta_star, found = carry
        eta = 0.5 * (lo + hi)
        val = f(eta)                              # subtract, exp, min, sum only
        hit = jnp.abs(val) <= tol
        active = found == 0
        take = jnp.logical_and(active, hit)       # first |f| <= tol wins (break)
        eta_star = jnp.where(take, eta, eta_star)
        found = jnp.where(take, jnp.int32(1), found)
        upd = jnp.logical_and(active, jnp.logical_not(hit))
        hi = jnp.where(jnp.logical_and(upd, val > 0.0), eta, hi)
        lo = jnp.where(jnp.logical_and(upd, val <= 0.0), eta, lo)
        return lo, hi, eta_star, found

    lo, hi, eta_star, found = jax.lax.fori_loop(
        0, n_iter, body, (lo, hi, jnp.float32(0.0), jnp.int32(0)))
    eta = jnp.where(found > 0, eta_star, 0.5 * (lo + hi))

    # optimal weights and CVaR-regularized value:  <p, v> - reg * KL(p || uniform)
    p = jnp.minimum(jnp.exp(w - eta * inv_reg), inv_size) * inv_m
    p = jnp.where(mask, p, 0.0)
    kl = log_m + jnp.sum(p * jnp.log(p + 1e-10))
    value = jnp.sum(p * v) - reg * kl
    out_ref[...] = jnp.broadcast_to(value, (1, 1)).astype(jnp.float32)

    # TODO(synk): hard-CVaR (reg == 0) needs a sort/top-k; chi-square geometry
    # branches are not lowered here.


# ---------------------------------------------------------------------------
# Wrapper
# ---------------------------------------------------------------------------
def robust_loss_cvar(outputs, targets, *, size, reg,
                     tol=BISECTION_TOL, max_iter=MAX_BISECTION_ITER):
    """Soft-CVaR RobustLoss forward (geometry='cvar', reg > 0, classification)."""
    assert 0.0 < size <= 1.0 and reg > 0.0
    B, C = outputs.shape
    logits = outputs.astype(jnp.float32)
    tgt = targets.reshape(B, 1).astype(jnp.int32)

    # ---- phase 1: tiled, pipelined per-sample cross-entropy ----
    tb_cap = (4 * 1024 * 1024) // (4 * max(C, 1))     # ~4 MiB f32 logits tile
    tb_cap = max(8, (tb_cap // 8) * 8)
    tb = min(512, tb_cap, _round_up(B, 8))            # multiple of 8 by construction
    b_pad = _round_up(B, tb)
    if b_pad != B:
        logits = jnp.pad(logits, ((0, b_pad - B), (0, 0)))
        tgt = jnp.pad(tgt, ((0, b_pad - B), (0, 0)))

    ce_cost = pl.CostEstimate(
        flops=6 * b_pad * C,
        transcendentals=b_pad * C,
        bytes_accessed=4 * b_pad * C + 8 * b_pad)
    v_col = pl.pallas_call(
        _cross_entropy_kernel,
        out_shape=jax.ShapeDtypeStruct((b_pad, 1), jnp.float32),
        grid=(b_pad // tb,),
        in_specs=[pl.BlockSpec((tb, C), lambda i: (i, 0)),
                  pl.BlockSpec((tb, 1), lambda i: (i, 0))],
        out_specs=pl.BlockSpec((tb, 1), lambda i: (i, 0)),
        compiler_params=pltpu.CompilerParams(
            dimension_semantics=("parallel",)),
        cost_estimate=ce_cost,
    )(logits, tgt)

    # ---- layout plumbing only: lane-dense (R, 128) slab of v (B on lanes) ----
    n_slab = _round_up(b_pad, 1024)
    v_flat = v_col.reshape(-1)
    if n_slab != b_pad:
        v_flat = jnp.pad(v_flat, (0, n_slab - b_pad))
    v_slab = v_flat.reshape(n_slab // 128, 128)

    # ---- phase 2: eta bisection + CVaR value on the lane-dense v ----
    n_iter = max(1, min(int(max_iter), _BISECTION_STEPS))
    eta_cost = pl.CostEstimate(
        flops=8 * n_slab * (n_iter + 4),
        transcendentals=n_slab * (n_iter + 4),
        bytes_accessed=4 * n_slab + 4)
    kernel2 = functools.partial(
        _soft_cvar_eta_kernel, batch=B, size=float(size), reg=float(reg),
        tol=float(tol), n_iter=n_iter)
    cparams = {}
    slab_bytes = 4 * n_slab
    if slab_bytes > 8 * 1024 * 1024:                  # very large batches only
        cparams["vmem_limit_bytes"] = min(2 * slab_bytes + (8 << 20), 48 << 20)
    out = pl.pallas_call(
        kernel2,
        out_shape=jax.ShapeDtypeStruct((1, 1), jnp.float32),
        in_specs=[pl.BlockSpec(memory_space=pltpu.MemorySpace.VMEM)],
        out_specs=pl.BlockSpec(memory_space=pltpu.MemorySpace.VMEM),
        compiler_params=pltpu.CompilerParams(**cparams),
        cost_estimate=eta_cost,
    )(v_slab)
    return out[0, 0]


# ---------------------------------------------------------------------------
# Pure numpy reference mirroring the PyTorch module (for a sanity check)
# ---------------------------------------------------------------------------
def _reference_robust_loss(logits, targets, size, reg,
                           tol=BISECTION_TOL, max_iter=MAX_BISECTION_ITER):
    logits = np.asarray(logits, dtype=np.float64)
    targets = np.asarray(targets, dtype=np.int64)
    mx = logits.max(axis=-1, keepdims=True)
    lse = mx[:, 0] + np.log(np.exp(logits - mx).sum(axis=-1))
    v = lse - logits[np.arange(logits.shape[0]), targets]
    m = v.shape[0]

    def f(eta):
        p = np.minimum(np.exp((v - eta) / reg), 1.0 / size) / m
        return 1.0 - p.sum()

    eta_min = reg * (np.log(np.sum(np.exp(v / reg - np.log(m)))))
    eta_max = float(v.max())
    lower, upper = f(eta_min), f(eta_max)
    while lower > 0 or upper < 0:
        interval = eta_max - eta_min
        if lower > 0:
            eta_max = eta_min
            eta_min -= 2 * interval
        else:
            eta_min = eta_max
            eta_max += 2 * interval
        lower, upper = f(eta_min), f(eta_max)
    eta = 0.5 * (eta_min + eta_max)
    for _ in range(max_iter):
        eta = 0.5 * (eta_min + eta_max)
        val = f(eta)
        if abs(val) <= tol:
            break
        if val > 0:
            eta_max = eta
        else:
            eta_min = eta
    p = np.minimum(np.exp((v - eta) / reg), 1.0 / size) / m
    kl = np.log(m) + (p * np.log(p + 1e-10)).sum()
    return float((p * v).sum() - reg * kl)


if __name__ == "__main__":
    key = jax.random.PRNGKey(0)

    # case 1: small, lane-aligned-ish batch
    k1, k2, k3, k4 = jax.random.split(key, 4)
    B1, C1 = 8, 16
    logits1 = jax.random.normal(k1, (B1, C1), dtype=jnp.float32)
    targets1 = jax.random.randint(k2, (B1,), 0, C1, dtype=jnp.int32)
    loss1 = jax.block_until_ready(robust_loss_cvar(logits1, targets1, size=0.5, reg=0.1))
    ref1 = _reference_robust_loss(logits1, targets1, 0.5, 0.1)
    assert jnp.isfinite(loss1)
    assert abs(float(loss1) - ref1) < 0.2, (float(loss1), ref1)

    # case 2: non-(8,128)-aligned shapes to exercise masking / padding
    B2, C2 = 50, 37
    logits2 = jax.random.normal(k3, (B2, C2), dtype=jnp.float32)
    targets2 = jax.random.randint(k4, (B2,), 0, C2, dtype=jnp.int32)
    loss2 = jax.block_until_ready(robust_loss_cvar(logits2, targets2, size=0.3, reg=0.05))
    ref2 = _reference_robust_loss(logits2, targets2, 0.3, 0.05)
    assert jnp.isfinite(loss2)
    assert abs(float(loss2) - ref2) < 0.2, (float(loss2), ref2)

    print("KERNEL_OK")
</pallas_src>

<mosaic_0001>
module attributes {stable_mosaic.version = 11 : i64} {
  func.func @_cross_entropy_kernel(%arg0: i32, %arg1: memref<8x16xf32, #tpu.memory_space<vmem>>, %arg2: memref<8x1xi32, #tpu.memory_space<vmem>>, %arg3: memref<8x1xf32, #tpu.memory_space<vmem>>) attributes {dimension_semantics = [#tpu.dimension_semantics<parallel>], iteration_bounds = array<i64: 1>, scalar_prefetch = 0 : i64, scratch_operands = 0 : i64, tpu.core_type = #tpu.core_type<tc>, window_params = [{transform_indices = @transform_0, window_bounds = array<i64: 8, 16>}, {transform_indices = @transform_1, window_bounds = array<i64: 8, 1>}, {transform_indices = @transform_2, window_bounds = array<i64: 8, 1>}]} {
    %c0 = arith.constant 0 : index
    %c0_0 = arith.constant 0 : index
    %0 = vector.load %arg1[%c0, %c0_0] : memref<8x16xf32, #tpu.memory_space<vmem>>, vector<8x16xf32>
    %c0_1 = arith.constant 0 : index
    %c0_2 = arith.constant 0 : index
    %1 = vector.load %arg2[%c0_1, %c0_2] : memref<8x1xi32, #tpu.memory_space<vmem>>, vector<8x1xi32>
    %cst = arith.constant dense<0xFF800000> : vector<8xf32>
    %2 = vector.multi_reduction <maximumf>, %0, %cst [1] : vector<8x16xf32> to vector<8xf32>
    %3 = vector.shape_cast %2 : vector<8xf32> to vector<8x1xf32>
    %4 = vector.broadcast %3 : vector<8x1xf32> to vector<8x16xf32>
    %5 = arith.subf %0, %4 : vector<8x16xf32>
    %6 = math.exp %5 : vector<8x16xf32>
    %cst_3 = arith.constant dense<0.000000e+00> : vector<8xf32>
    %7 = vector.multi_reduction <add>, %6, %cst_3 [1] : vector<8x16xf32> to vector<8xf32>
    %8 = vector.shape_cast %7 : vector<8xf32> to vector<8x1xf32>
    %9 = math.log %8 : vector<8x1xf32>
    %10 = arith.addf %3, %9 : vector<8x1xf32>
    %11 = tpu.iota {dimensions = array<i32: 1>} : vector<8x16xi32>
    %12 = vector.broadcast %1 : vector<8x1xi32> to vector<8x16xi32>
    %13 = arith.cmpi eq, %11, %12 : vector<8x16xi32>
    %cst_4 = arith.constant 0.000000e+00 : f32
    %14 = vector.broadcast %cst_4 : f32 to vector<8x16xf32>
    %15 = arith.select %13, %0, %14 : vector<8x16xi1>, vector<8x16xf32>
    %cst_5 = arith.constant dense<0.000000e+00> : vector<8xf32>
    %16 = vector.multi_reduction <add>, %15, %cst_5 [1] : vector<8x16xf32> to vector<8xf32>
    %17 = vector.shape_cast %16 : vector<8xf32> to vector<8x1xf32>
    %18 = arith.subf %10, %17 : vector<8x1xf32>
    %c0_6 = arith.constant 0 : index
    %c0_7 = arith.constant 0 : index
    %19 = vector.load %arg3[%c0_6, %c0_7] : memref<8x1xf32, #tpu.memory_space<vmem>>, vector<8x1xf32>
    tpu.vector_store %arg3[%c0_6, %c0_7], %18 {strides = array<i32>} : memref<8x1xf32, #tpu.memory_space<vmem>>, vector<8x1xf32>,
    return
  }
  func.func @transform_0(%arg0: i32) -> (i32, i32) {
    %c0_i32 = arith.constant 0 : i32
    %c0_i32_0 = arith.constant 0 : i32
    return %arg0, %c0_i32 : i32, i32
  }
  func.func @transform_1(%arg0: i32) -> (i32, i32) {
    %c0_i32 = arith.constant 0 : i32
    %c0_i32_0 = arith.constant 0 : i32
    return %arg0, %c0_i32 : i32, i32
  }
  func.func @transform_2(%arg0: i32) -> (i32, i32) {
    %c0_i32 = arith.constant 0 : i32
    %c0_i32_0 = arith.constant 0 : i32
    return %arg0, %c0_i32 : i32, i32
  }
}

</mosaic_0001>

<bundles_post_ra>
// kernel: tpu_custom_call.1
= control target key start
LH: loop header
LB: loop body
LE: loop exit
PB: predicated region body
PF: predicated region fallthrough
CT: control target
= control target key end

     0   :  { %vm13_vm0 = vcmask 130048   ;;  %v49_v1 = vmov 0   ;;  %v26_v7 = vlaneseq  ;;  %vm37_vm2 = vcmask 7168   ;;  %s77_s0 = inlined_call_operand.vmem [shape: f32[8,16], index: 0, kind: input, shape index: {}]   ;;  %s78_s1 = inlined_call_operand.vmem [shape: s32[8,1], index: 1, kind: input, shape index: {}]   ;;  %s79_s2 = inlined_call_operand.vmem [shape: f32[8,1], index: 2, kind: output, shape index: {}]  }
   0x1   :  { %v11_v0 = vld [vmem:[%s77_s0] sm:$0xff]  ;;  %44 = vset.pattern.permute.xlu0 %v49_v1 }
   0x2   :  { %v14_v2 = vsel %vm13_vm0, %v11_v0, -inf  ;;  %v12_v3 = vld [vmem:[%s78_s1] sm:$0xff]  ;;  %v27_v8 = vand.u32 127, %v26_v7 }
   0x3   :  { %15 = vmax.xlane.f32.xlu0 %v14_v2 }
  0x19   :  { %29 = vperm.xlu0 %44, %v12_v3  }
  0x90   :  { %v16_v4 = vpop.xlane.xlu0 %15 }
  0x91   :  { %v17_v5 = vsub.f32 %v11_v0, %v16_v4 }
  0x93   :  { %v18_v6 = vmul.f32 1.442695, %v17_v5 }
  0x95   :  { %45 = vpow2.f32 %v18_v6 }
  0x98   :  { %v30_v9 = vpop.permute.xlu0 %29 }
  0x99   :  { %vm31_vm1 = vcmp.eq.s32.totalorder %v27_v8, %v30_v9 }
  0x9a   :  { %v32_v11 = vsel %vm31_vm1, %v11_v0, 0.0 }
  0x9b   :  { %v33_v13 = vsel %vm13_vm0, %v32_v11, 0.0 }
  0x9f   :  { %v46_v10 = vpop.eup %45 }
  0xa0   :  { %v20_v12 = vsel %vm13_vm0, %v46_v10, 0.0 }
  0xa1   :  { %21 = vadd.xlane.f32.xlu1 %v20_v12 }
  0xa5   :  { %34 = vadd.xlane.f32.xlu1 %v33_v13 }
 0x12e   :  { %v22_v14 = vpop.xlane.xlu1 %21 }
 0x12f   :  { %47 = vlog2.f32 %v22_v14 }
 0x132   :  { %v35_v17 = vpop.xlane.xlu1 %34 }
 0x139   :  { %v48_v15 = vpop.eup %47 }
 0x13a   :  { %v24_v16 = vmul.f32 0.6931472, %v48_v15 }
 0x13c   :  { %v25_v18 = vadd.f32 %v24_v16, %v16_v4 }
 0x13e   :  { %v36_v19 = vsub.f32 %v25_v18, %v35_v17 }
 0x140   :  { %38 = vst.msk [vmem:[%s79_s2] sm:$0xff] %vm37_vm2, %v36_v19 }

</bundles_post_ra>
